<compile_context>
chip_gen: v5e
topology: v5e:2x2
jax: 0.10.0
libtpu: 0.0.40
codegen_flags: <defaults>
</compile_context>

<pallas_src>
import functools

import jax
import jax.numpy as jnp
from jax.experimental import pallas as pl
from jax.experimental.pallas import tpu as pltpu

LN_EPS = 1e-5          # torch.nn.LayerNorm default
LEAKY_SLOPE = 0.01     # torch.nn.LeakyReLU default
LANE = 128             # TPU lane width

_HAS_BUFFERED = hasattr(pl, "Buffered")


def _round_up(n, m):
    return ((n + m - 1) // m) * m


def _tpu_vmem_bytes():
    """Physical VMEM capacity; conservative 64 MiB if the query is unavailable."""
    try:
        return int(pltpu.get_tpu_info().vmem_capacity_bytes)
    except Exception:
        return 64 << 20


def mlp_init_kernel(x_ref, w1_ref, w2_ref, w3_ref, vec_ref, b3_ref, o_ref,
                    *, hidden_dim, hidden_pad):
    """Fused 3-layer MLP with LayerNorm + LeakyReLU after layers 1 and 2.

    vec_ref rows: 0=b1, 1=ln1_gamma, 2=ln1_beta, 3=b2, 4=ln2_gamma, 5=ln2_beta.
    Padded hidden lanes (>= hidden_dim) are exactly 0 through every layer because the
    padded weight columns / biases / gammas / betas are 0.
    """
    x = x_ref[...]
    wdt = w1_ref.dtype  # f32 or bf16 weights; accumulation is always f32.
    tb = x.shape[0]

    vecs = vec_ref[...]
    b1, g1, be1 = vecs[0:1, :], vecs[1:2, :], vecs[2:3, :]
    b2, g2, be2 = vecs[3:4, :], vecs[4:5, :], vecs[5:6, :]

    # Lane mask for LN over the true hidden width, built once and shared by both LNs.
    if hidden_pad != hidden_dim:
        lane = jax.lax.broadcasted_iota(jnp.int32, (tb, hidden_pad), 1)
        mask = lane < hidden_dim
    else:
        mask = None
    inv_n = 1.0 / hidden_dim

    def ln_lrelu(h, gamma, beta):
        # Mean over the true width (padded lanes of h are exactly 0).
        mu = jnp.sum(h, axis=-1, keepdims=True) * inv_n
        xc = h - mu
        if mask is not None:
            xc = jnp.where(mask, xc, 0.0)
        var = jnp.sum(xc * xc, axis=-1, keepdims=True) * inv_n   # biased var (PyTorch LN)
        h = xc * jax.lax.rsqrt(var + LN_EPS) * gamma + beta      # padded lanes stay 0
        return jnp.where(h >= 0, h, LEAKY_SLOPE * h)

    # Linear 1 + LayerNorm + LeakyReLU
    h = jnp.dot(x.astype(wdt), w1_ref[...], preferred_element_type=jnp.float32) + b1
    h = ln_lrelu(h, g1, be1)

    # Linear 2 + LayerNorm + LeakyReLU
    h = jnp.dot(h.astype(wdt), w2_ref[...], preferred_element_type=jnp.float32) + b2
    h = ln_lrelu(h, g2, be2)

    # Linear 3 (output) -- stored at true out_dim width.
    o_ref[...] = (jnp.dot(h.astype(wdt), w3_ref[...], preferred_element_type=jnp.float32)
                  + b3_ref[...]).astype(o_ref.dtype)


def _pick_batch_tile(B):
    # Single-TC chips (v5e/v6e): maximize rows per step (no forced multi-step grid);
    # per-step pipeline overhead is ~0.35us and small M starves the MXU.
    # Cap at 512 so very large batches still produce >= 2 'parallel' grid steps that
    # can shard across v7x's two TensorCores while keeping f32 intermediates small.
    if B <= 512:
        return B
    for tb in (512, 256, 128, 64, 32, 16, 8):
        if B % tb == 0:
            return tb
    return B  # odd batch: one full block (exempt from the 8-row rule)


def _pad2d(a, rows, cols):
    r, c = a.shape
    if r == rows and c == cols:
        return a
    return jnp.pad(a, ((0, rows - r), (0, cols - c)))


def prepare_params(params, *, weights_dtype=jnp.float32):
    """One-time weight preparation (pad hidden dim, cast, pack LN vectors).

    Call once outside the hot path and reuse the result for every forward call.
    weights_dtype=jnp.bfloat16 is the recommended MXU fast path on v6e/v7x.
    """
    inp_dim, hidden_dim = params["w1"].shape
    out_dim = params["w3"].shape[1]
    hid_p = _round_up(hidden_dim, LANE)

    w1 = _pad2d(params["w1"], inp_dim, hid_p).astype(weights_dtype)
    w2 = _pad2d(params["w2"], hid_p, hid_p).astype(weights_dtype)
    w3 = _pad2d(params["w3"], hid_p, out_dim).astype(weights_dtype)

    stack = jnp.concatenate(
        [params["b1"].reshape(1, -1), params["g1"].reshape(1, -1),
         params["be1"].reshape(1, -1), params["b2"].reshape(1, -1),
         params["g2"].reshape(1, -1), params["be2"].reshape(1, -1)],
        axis=0)                                                   # (6, hidden_dim)
    vec = jnp.zeros((8, hid_p), jnp.float32).at[:6, :hidden_dim].set(stack)
    b3 = params["b3"].reshape(1, out_dim).astype(jnp.float32)

    return {
        "w1": w1, "w2": w2, "w3": w3, "vec": vec, "b3": b3,
        "dims": (inp_dim, hidden_dim, hid_p, out_dim),
        "weights_dtype": jnp.dtype(weights_dtype),
    }


def mlp_init_forward(x, prepared, *, batch_tile=None):
    """Fused MLP_Init forward. x: [B, inp_dim] float32 -> [B, out_dim] float32."""
    B, inp_dim = x.shape
    p_inp, hidden_dim, hid_p, out_dim = prepared["dims"]
    assert inp_dim == p_inp, "input width does not match the prepared weights"

    tb = _pick_batch_tile(B) if batch_tile is None else batch_tile
    assert B % tb == 0 and (tb == B or tb % 8 == 0)
    grid = (B // tb,)

    wbytes = prepared["weights_dtype"].itemsize
    weight_elems = inp_dim * hid_p + hid_p * hid_p + hid_p * out_dim
    vmem_cap = _tpu_vmem_bytes()

    cost = pl.CostEstimate(
        flops=2 * B * (inp_dim * hidden_dim + hidden_dim * hidden_dim
                       + hidden_dim * out_dim),
        transcendentals=2 * B,  # one rsqrt per LayerNorm row
        bytes_accessed=int(x.size * 4 + B * out_dim * 4
                           + weight_elems * wbytes + (8 * hid_p + out_dim) * 4),
    )

    kernel = functools.partial(mlp_init_kernel,
                               hidden_dim=hidden_dim, hidden_pad=hid_p)

    def build(single_buffer_consts):
        def const_spec(shape):
            idx = lambda i: (0, 0)
            if single_buffer_consts:
                # Constant blocks never change across grid steps -> one VMEM buffer.
                return pl.BlockSpec(shape, idx, pipeline_mode=pl.Buffered(1))
            return pl.BlockSpec(shape, idx)

        wf = 1 if single_buffer_consts else 2
        const_bytes = wf * (weight_elems * wbytes + (8 * hid_p + out_dim) * 4)
        stream_bytes = 2 * tb * (inp_dim + out_dim) * 4          # double-buffered x / out
        live_bytes = 3 * tb * hid_p * 4                          # f32 intermediates
        need = const_bytes + stream_bytes + live_bytes + (8 << 20)
        vmem_limit = int(min(int(0.8 * vmem_cap), max(32 << 20, need)))

        return pl.pallas_call(
            kernel,
            out_shape=jax.ShapeDtypeStruct((B, out_dim), x.dtype),
            grid_spec=pltpu.PrefetchScalarGridSpec(
                num_scalar_prefetch=0,
                grid=grid,
                in_specs=[
                    pl.BlockSpec((tb, inp_dim), lambda i: (i, 0)),   # x (true width)
                    const_spec((inp_dim, hid_p)),                    # w1
                    const_spec((hid_p, hid_p)),                      # w2
                    const_spec((hid_p, out_dim)),                    # w3
                    const_spec((8, hid_p)),                          # packed b/gamma/beta
                    const_spec((1, out_dim)),                        # b3
                ],
                out_specs=pl.BlockSpec((tb, out_dim), lambda i: (i, 0)),
            ),
            # NOTE: plain 'parallel' shards the batch axis across v7x's 2 TCs when
            # grid >= 2; switch to pltpu.CORE_PARALLEL only if xprof shows 1 TC busy.
            compiler_params=pltpu.CompilerParams(
                dimension_semantics=("parallel",),
                vmem_limit_bytes=vmem_limit,
            ),
            cost_estimate=cost,
        )

    args = (x, prepared["w1"], prepared["w2"], prepared["w3"],
            prepared["vec"], prepared["b3"])

    if _HAS_BUFFERED:
        try:
            return build(True)(*args)
        except Exception:
            pass  # pipeline_mode=Buffered(1) unsupported on this build -> double-buffer
    return build(False)(*args)


def init_params(key, inp_dim, hidden_dim, out_dim):
    """PyTorch-style init: Linear ~ U(-1/sqrt(fan_in), 1/sqrt(fan_in)); LN gamma=1, beta=0."""
    ks = jax.random.split(key, 6)

    def lin(kw, kb, fan_in, fan_out):
        bound = 1.0 / jnp.sqrt(fan_in)
        w = jax.random.uniform(kw, (fan_in, fan_out), jnp.float32, -bound, bound)
        b = jax.random.uniform(kb, (1, fan_out), jnp.float32, -bound, bound)
        return w, b

    w1, b1 = lin(ks[0], ks[1], inp_dim, hidden_dim)
    w2, b2 = lin(ks[2], ks[3], hidden_dim, hidden_dim)
    w3, b3 = lin(ks[4], ks[5], hidden_dim, out_dim)
    return {
        "w1": w1, "b1": b1,
        "g1": jnp.ones((1, hidden_dim), jnp.float32),
        "be1": jnp.zeros((1, hidden_dim), jnp.float32),
        "w2": w2, "b2": b2,
        "g2": jnp.ones((1, hidden_dim), jnp.float32),
        "be2": jnp.zeros((1, hidden_dim), jnp.float32),
        "w3": w3, "b3": b3,
    }


def _reference(x, p):
    def ln(h):
        mu = jnp.mean(h, axis=-1, keepdims=True)
        var = jnp.mean((h - mu) ** 2, axis=-1, keepdims=True)
        return (h - mu) / jnp.sqrt(var + LN_EPS)

    def lrelu(h):
        return jnp.where(h >= 0, h, LEAKY_SLOPE * h)

    h = lrelu(ln(x @ p["w1"] + p["b1"]) * p["g1"] + p["be1"])
    h = lrelu(ln(h @ p["w2"] + p["b2"]) * p["g2"] + p["be2"])
    return h @ p["w3"] + p["b3"]


if __name__ == "__main__":
    key = jax.random.PRNGKey(0)
    kx, kp = jax.random.split(key)

    # Small shapes consistent with MLP_Init(inp_dim=16, hidden_dim=32, out_dim=8).
    batch, inp_dim, hidden_dim, out_dim = 16, 16, 32, 8
    x = jax.random.normal(kx, (batch, inp_dim), jnp.float32)
    params = init_params(kp, inp_dim, hidden_dim, out_dim)

    ref = _reference(x, params)

    # One-time weight preparation (outside the hot path), then fused forward.
    prep_f32 = prepare_params(params)                       # exact PyTorch semantics
    out = mlp_init_forward(x, prep_f32)
    jax.block_until_ready(out)
    assert out.shape == ref.shape
    assert jnp.allclose(out, ref, atol=1e-4, rtol=1e-4), "f32 path mismatch vs JAX reference"

    # bf16 weight storage: v6e/v7x MXU fast path (f32 accumulation, f32 LN/LeakyReLU).
    prep_bf16 = prepare_params(params, weights_dtype=jnp.bfloat16)
    out_bf16 = mlp_init_forward(x, prep_bf16)
    jax.block_until_ready(out_bf16)
    assert jnp.allclose(out_bf16, ref, atol=1e-1, rtol=1e-1), "bf16 path mismatch vs JAX reference"

    print("KERNEL_OK")
</pallas_src>

<mosaic_0001>
module attributes {stable_mosaic.version = 11 : i64} {
  func.func @mlp_init_kernel(%arg0: i32, %arg1: memref<16x16xf32, #tpu.memory_space<vmem>>, %arg2: memref<16x128xf32, #tpu.memory_space<vmem>>, %arg3: memref<128x128xf32, #tpu.memory_space<vmem>>, %arg4: memref<128x8xf32, #tpu.memory_space<vmem>>, %arg5: memref<8x128xf32, #tpu.memory_space<vmem>>, %arg6: memref<1x8xf32, #tpu.memory_space<vmem>>, %arg7: memref<16x8xf32, #tpu.memory_space<vmem>>) attributes {dimension_semantics = [#tpu.dimension_semantics<parallel>], iteration_bounds = array<i64: 1>, scalar_prefetch = 0 : i64, scratch_operands = 0 : i64, tpu.core_type = #tpu.core_type<tc>, window_params = [{transform_indices = @transform_0, window_bounds = array<i64: 16, 16>}, {pipeline_mode = #tpu.pipeline_mode<synchronous>, transform_indices = @transform_1, window_bounds = array<i64: 16, 128>}, {pipeline_mode = #tpu.pipeline_mode<synchronous>, transform_indices = @transform_2, window_bounds = array<i64: 128, 128>}, {pipeline_mode = #tpu.pipeline_mode<synchronous>, transform_indices = @transform_3, window_bounds = array<i64: 128, 8>}, {pipeline_mode = #tpu.pipeline_mode<synchronous>, transform_indices = @transform_4, window_bounds = array<i64: 8, 128>}, {pipeline_mode = #tpu.pipeline_mode<synchronous>, transform_indices = @transform_5, window_bounds = array<i64: 1, 8>}, {transform_indices = @transform_6, window_bounds = array<i64: 16, 8>}]} {
    %c0 = arith.constant 0 : index
    %c0_0 = arith.constant 0 : index
    %0 = vector.load %arg1[%c0, %c0_0] : memref<16x16xf32, #tpu.memory_space<vmem>>, vector<16x16xf32>
    %c0_1 = arith.constant 0 : index
    %c0_2 = arith.constant 0 : index
    %1 = vector.load %arg5[%c0_1, %c0_2] : memref<8x128xf32, #tpu.memory_space<vmem>>, vector<8x128xf32>
    %2 = vector.extract_strided_slice %1 {offsets = [0, 0], sizes = [1, 128], strides = [1, 1]} : vector<8x128xf32> to vector<1x128xf32>
    %3 = vector.extract_strided_slice %1 {offsets = [1, 0], sizes = [1, 128], strides = [1, 1]} : vector<8x128xf32> to vector<1x128xf32>
    %4 = vector.extract_strided_slice %1 {offsets = [2, 0], sizes = [1, 128], strides = [1, 1]} : vector<8x128xf32> to vector<1x128xf32>
    %5 = vector.extract_strided_slice %1 {offsets = [3, 0], sizes = [1, 128], strides = [1, 1]} : vector<8x128xf32> to vector<1x128xf32>
    %6 = vector.extract_strided_slice %1 {offsets = [4, 0], sizes = [1, 128], strides = [1, 1]} : vector<8x128xf32> to vector<1x128xf32>
    %7 = vector.extract_strided_slice %1 {offsets = [5, 0], sizes = [1, 128], strides = [1, 1]} : vector<8x128xf32> to vector<1x128xf32>
    %8 = tpu.iota {dimensions = array<i32: 1>} : vector<16x128xi32>
    %c32_i32 = arith.constant 32 : i32
    %9 = vector.broadcast %c32_i32 : i32 to vector<16x128xi32>
    %10 = arith.cmpi slt, %8, %9 : vector<16x128xi32>
    %c0_3 = arith.constant 0 : index
    %c0_4 = arith.constant 0 : index
    %11 = vector.load %arg2[%c0_3, %c0_4] : memref<16x128xf32, #tpu.memory_space<vmem>>, vector<16x128xf32>
    %cst = arith.constant dense<0.000000e+00> : vector<16x128xf32>
    %12 = tpu.matmul %0, %11, %cst {dimension_numbers = #tpu.dot_dimension_numbers<[1], [0], [0], [1], [0, 0, 1, 1], [], []>} : vector<16x16xf32>, vector<16x128xf32>, vector<16x128xf32> -> vector<16x128xf32>
    %13 = vector.broadcast %2 : vector<1x128xf32> to vector<16x128xf32>
    %14 = arith.addf %12, %13 : vector<16x128xf32>
    %cst_5 = arith.constant dense<0.000000e+00> : vector<16xf32>
    %15 = vector.multi_reduction <add>, %14, %cst_5 [1] : vector<16x128xf32> to vector<16xf32>
    %16 = vector.shape_cast %15 : vector<16xf32> to vector<16x1xf32>
    %cst_6 = arith.constant 3.125000e-02 : f32
    %17 = vector.broadcast %cst_6 : f32 to vector<16x1xf32>
    %18 = arith.mulf %16, %17 : vector<16x1xf32>
    %19 = vector.broadcast %18 : vector<16x1xf32> to vector<16x128xf32>
    %20 = arith.subf %14, %19 : vector<16x128xf32>
    %cst_7 = arith.constant 0.000000e+00 : f32
    %21 = vector.broadcast %cst_7 : f32 to vector<16x128xf32>
    %22 = arith.select %10, %20, %21 : vector<16x128xi1>, vector<16x128xf32>
    %23 = arith.mulf %22, %22 : vector<16x128xf32>
    %cst_8 = arith.constant dense<0.000000e+00> : vector<16xf32>
    %24 = vector.multi_reduction <add>, %23, %cst_8 [1] : vector<16x128xf32> to vector<16xf32>
    %25 = vector.shape_cast %24 : vector<16xf32> to vector<16x1xf32>
    %cst_9 = arith.constant 3.125000e-02 : f32
    %26 = vector.broadcast %cst_9 : f32 to vector<16x1xf32>
    %27 = arith.mulf %25, %26 : vector<16x1xf32>
    %cst_10 = arith.constant 9.99999974E-6 : f32
    %28 = vector.broadcast %cst_10 : f32 to vector<16x1xf32>
    %29 = arith.addf %27, %28 : vector<16x1xf32>
    %30 = math.rsqrt %29 : vector<16x1xf32>
    %31 = vector.broadcast %30 : vector<16x1xf32> to vector<16x128xf32>
    %32 = arith.mulf %22, %31 : vector<16x128xf32>
    %33 = vector.broadcast %3 : vector<1x128xf32> to vector<16x128xf32>
    %34 = arith.mulf %32, %33 : vector<16x128xf32>
    %35 = vector.broadcast %4 : vector<1x128xf32> to vector<16x128xf32>
    %36 = arith.addf %34, %35 : vector<16x128xf32>
    %cst_11 = arith.constant 0.000000e+00 : f32
    %37 = vector.broadcast %cst_11 : f32 to vector<16x128xf32>
    %38 = arith.cmpf oge, %36, %37 : vector<16x128xf32>
    %cst_12 = arith.constant 0.00999999977 : f32
    %39 = vector.broadcast %cst_12 : f32 to vector<16x128xf32>
    %40 = arith.mulf %39, %36 : vector<16x128xf32>
    %41 = arith.select %38, %36, %40 : vector<16x128xi1>, vector<16x128xf32>
    %c0_13 = arith.constant 0 : index
    %c0_14 = arith.constant 0 : index
    %42 = vector.load %arg3[%c0_13, %c0_14] : memref<128x128xf32, #tpu.memory_space<vmem>>, vector<128x128xf32>
    %cst_15 = arith.constant dense<0.000000e+00> : vector<16x128xf32>
    %43 = tpu.matmul %41, %42, %cst_15 {dimension_numbers = #tpu.dot_dimension_numbers<[1], [0], [0], [1], [0, 0, 1, 1], [], []>} : vector<16x128xf32>, vector<128x128xf32>, vector<16x128xf32> -> vector<16x128xf32>
    %44 = vector.broadcast %5 : vector<1x128xf32> to vector<16x128xf32>
    %45 = arith.addf %43, %44 : vector<16x128xf32>
    %cst_16 = arith.constant dense<0.000000e+00> : vector<16xf32>
    %46 = vector.multi_reduction <add>, %45, %cst_16 [1] : vector<16x128xf32> to vector<16xf32>
    %47 = vector.shape_cast %46 : vector<16xf32> to vector<16x1xf32>
    %cst_17 = arith.constant 3.125000e-02 : f32
    %48 = vector.broadcast %cst_17 : f32 to vector<16x1xf32>
    %49 = arith.mulf %47, %48 : vector<16x1xf32>
    %50 = vector.broadcast %49 : vector<16x1xf32> to vector<16x128xf32>
    %51 = arith.subf %45, %50 : vector<16x128xf32>
    %cst_18 = arith.constant 0.000000e+00 : f32
    %52 = vector.broadcast %cst_18 : f32 to vector<16x128xf32>
    %53 = arith.select %10, %51, %52 : vector<16x128xi1>, vector<16x128xf32>
    %54 = arith.mulf %53, %53 : vector<16x128xf32>
    %cst_19 = arith.constant dense<0.000000e+00> : vector<16xf32>
    %55 = vector.multi_reduction <add>, %54, %cst_19 [1] : vector<16x128xf32> to vector<16xf32>
    %56 = vector.shape_cast %55 : vector<16xf32> to vector<16x1xf32>
    %cst_20 = arith.constant 3.125000e-02 : f32
    %57 = vector.broadcast %cst_20 : f32 to vector<16x1xf32>
    %58 = arith.mulf %56, %57 : vector<16x1xf32>
    %cst_21 = arith.constant 9.99999974E-6 : f32
    %59 = vector.broadcast %cst_21 : f32 to vector<16x1xf32>
    %60 = arith.addf %58, %59 : vector<16x1xf32>
    %61 = math.rsqrt %60 : vector<16x1xf32>
    %62 = vector.broadcast %61 : vector<16x1xf32> to vector<16x128xf32>
    %63 = arith.mulf %53, %62 : vector<16x128xf32>
    %64 = vector.broadcast %6 : vector<1x128xf32> to vector<16x128xf32>
    %65 = arith.mulf %63, %64 : vector<16x128xf32>
    %66 = vector.broadcast %7 : vector<1x128xf32> to vector<16x128xf32>
    %67 = arith.addf %65, %66 : vector<16x128xf32>
    %cst_22 = arith.constant 0.000000e+00 : f32
    %68 = vector.broadcast %cst_22 : f32 to vector<16x128xf32>
    %69 = arith.cmpf oge, %67, %68 : vector<16x128xf32>
    %cst_23 = arith.constant 0.00999999977 : f32
    %70 = vector.broadcast %cst_23 : f32 to vector<16x128xf32>
    %71 = arith.mulf %70, %67 : vector<16x128xf32>
    %72 = arith.select %69, %67, %71 : vector<16x128xi1>, vector<16x128xf32>
    %c0_24 = arith.constant 0 : index
    %c0_25 = arith.constant 0 : index
    %73 = vector.load %arg4[%c0_24, %c0_25] : memref<128x8xf32, #tpu.memory_space<vmem>>, vector<128x8xf32>
    %cst_26 = arith.constant dense<0.000000e+00> : vector<16x8xf32>
    %74 = tpu.matmul %72, %73, %cst_26 {dimension_numbers = #tpu.dot_dimension_numbers<[1], [0], [0], [1], [0, 0, 1, 1], [], []>} : vector<16x128xf32>, vector<128x8xf32>, vector<16x8xf32> -> vector<16x8xf32>
    %c0_27 = arith.constant 0 : index
    %c0_28 = arith.constant 0 : index
    %75 = vector.load %arg6[%c0_27, %c0_28] : memref<1x8xf32, #tpu.memory_space<vmem>>, vector<1x8xf32>
    %76 = vector.broadcast %75 : vector<1x8xf32> to vector<16x8xf32>
    %77 = arith.addf %74, %76 : vector<16x8xf32>
    %c0_29 = arith.constant 0 : index
    %c0_30 = arith.constant 0 : index
    %78 = vector.load %arg7[%c0_29, %c0_30] : memref<16x8xf32, #tpu.memory_space<vmem>>, vector<16x8xf32>
    tpu.vector_store %arg7[%c0_29, %c0_30], %77 {strides = array<i32>} : memref<16x8xf32, #tpu.memory_space<vmem>>, vector<16x8xf32>,
    return
  }
  func.func @transform_0(%arg0: i32) -> (i32, i32) {
    %c0_i32 = arith.constant 0 : i32
    %c0_i32_0 = arith.constant 0 : i32
    return %arg0, %c0_i32 : i32, i32
  }
  func.func @transform_1(%arg0: i32) -> (i32, i32) {
    %c0_i32 = arith.constant 0 : i32
    %c0_i32_0 = arith.constant 0 : i32
    %c0_i32_1 = arith.constant 0 : i32
    return %c0_i32, %c0_i32_0 : i32, i32
  }
  func.func @transform_2(%arg0: i32) -> (i32, i32) {
    %c0_i32 = arith.constant 0 : i32
    %c0_i32_0 = arith.constant 0 : i32
    %c0_i32_1 = arith.constant 0 : i32
    return %c0_i32, %c0_i32_0 : i32, i32
  }
  func.func @transform_3(%arg0: i32) -> (i32, i32) {
    %c0_i32 = arith.constant 0 : i32
    %c0_i32_0 = arith.constant 0 : i32
    %c0_i32_1 = arith.constant 0 : i32
    return %c0_i32, %c0_i32_0 : i32, i32
  }
  func.func @transform_4(%arg0: i32) -> (i32, i32) {
    %c0_i32 = arith.constant 0 : i32
    %c0_i32_0 = arith.constant 0 : i32
    %c0_i32_1 = arith.constant 0 : i32
    return %c0_i32, %c0_i32_0 : i32, i32
  }
  func.func @transform_5(%arg0: i32) -> (i32, i32) {
    %c0_i32 = arith.constant 0 : i32
    %c0_i32_0 = arith.constant 0 : i32
    %c0_i32_1 = arith.constant 0 : i32
    return %c0_i32, %c0_i32_0 : i32, i32
  }
  func.func @transform_6(%arg0: i32) -> (i32, i32) {
    %c0_i32 = arith.constant 0 : i32
    %c0_i32_0 = arith.constant 0 : i32
    return %arg0, %c0_i32 : i32, i32
  }
}

module attributes {stable_mosaic.version = 11 : i64} {
  func.func @mlp_init_kernel(%arg0: i32, %arg1: memref<16x16xf32, #tpu.memory_space<vmem>>, %arg2: memref<16x128xf32, #tpu.memory_space<vmem>>, %arg3: memref<128x128xf32, #tpu.memory_space<vmem>>, %arg4: memref<128x8xf32, #tpu.memory_space<vmem>>, %arg5: memref<8x128xf32, #tpu.memory_space<vmem>>, %arg6: memref<1x8xf32, #tpu.memory_space<vmem>>, %arg7: memref<16x8xf32, #tpu.memory_space<vmem>>) attributes {dimension_semantics = [#tpu.dimension_semantics<parallel>], iteration_bounds = array<i64: 1>, scalar_prefetch = 0 : i64, scratch_operands = 0 : i64, tpu.core_type = #tpu.core_type<tc>, window_params = [{transform_indices = @transform_0, window_bounds = array<i64: 16, 16>}, {pipeline_mode = #tpu.pipeline_mode<synchronous>, transform_indices = @transform_1, window_bounds = array<i64: 16, 128>}, {pipeline_mode = #tpu.pipeline_mode<synchronous>, transform_indices = @transform_2, window_bounds = array<i64: 128, 128>}, {pipeline_mode = #tpu.pipeline_mode<synchronous>, transform_indices = @transform_3, window_bounds = array<i64: 128, 8>}, {pipeline_mode = #tpu.pipeline_mode<synchronous>, transform_indices = @transform_4, window_bounds = array<i64: 8, 128>}, {pipeline_mode = #tpu.pipeline_mode<synchronous>, transform_indices = @transform_5, window_bounds = array<i64: 1, 8>}, {transform_indices = @transform_6, window_bounds = array<i64: 16, 8>}]} {
    %c0 = arith.constant 0 : index
    %c0_0 = arith.constant 0 : index
    %0 = vector.load %arg1[%c0, %c0_0] : memref<16x16xf32, #tpu.memory_space<vmem>>, vector<16x16xf32>
    %c0_1 = arith.constant 0 : index
    %c0_2 = arith.constant 0 : index
    %1 = vector.load %arg5[%c0_1, %c0_2] : memref<8x128xf32, #tpu.memory_space<vmem>>, vector<8x128xf32>
    %2 = vector.extract_strided_slice %1 {offsets = [0, 0], sizes = [1, 128], strides = [1, 1]} : vector<8x128xf32> to vector<1x128xf32>
    %3 = vector.extract_strided_slice %1 {offsets = [1, 0], sizes = [1, 128], strides = [1, 1]} : vector<8x128xf32> to vector<1x128xf32>
    %4 = vector.extract_strided_slice %1 {offsets = [2, 0], sizes = [1, 128], strides = [1, 1]} : vector<8x128xf32> to vector<1x128xf32>
    %5 = vector.extract_strided_slice %1 {offsets = [3, 0], sizes = [1, 128], strides = [1, 1]} : vector<8x128xf32> to vector<1x128xf32>
    %6 = vector.extract_strided_slice %1 {offsets = [4, 0], sizes = [1, 128], strides = [1, 1]} : vector<8x128xf32> to vector<1x128xf32>
    %7 = vector.extract_strided_slice %1 {offsets = [5, 0], sizes = [1, 128], strides = [1, 1]} : vector<8x128xf32> to vector<1x128xf32>
    %8 = tpu.iota {dimensions = array<i32: 1>} : vector<16x128xi32>
    %c32_i32 = arith.constant 32 : i32
    %9 = vector.broadcast %c32_i32 : i32 to vector<16x128xi32>
    %10 = arith.cmpi slt, %8, %9 : vector<16x128xi32>
    %c0_3 = arith.constant 0 : index
    %c0_4 = arith.constant 0 : index
    %11 = vector.load %arg2[%c0_3, %c0_4] : memref<16x128xf32, #tpu.memory_space<vmem>>, vector<16x128xf32>
    %cst = arith.constant dense<0.000000e+00> : vector<16x128xf32>
    %12 = tpu.matmul %0, %11, %cst {dimension_numbers = #tpu.dot_dimension_numbers<[1], [0], [0], [1], [0, 0, 1, 1], [], []>} : vector<16x16xf32>, vector<16x128xf32>, vector<16x128xf32> -> vector<16x128xf32>
    %13 = vector.broadcast %2 : vector<1x128xf32> to vector<16x128xf32>
    %14 = arith.addf %12, %13 : vector<16x128xf32>
    %cst_5 = arith.constant dense<0.000000e+00> : vector<16xf32>
    %15 = vector.multi_reduction <add>, %14, %cst_5 [1] : vector<16x128xf32> to vector<16xf32>
    %16 = vector.shape_cast %15 : vector<16xf32> to vector<16x1xf32>
    %cst_6 = arith.constant 3.125000e-02 : f32
    %17 = vector.broadcast %cst_6 : f32 to vector<16x1xf32>
    %18 = arith.mulf %16, %17 : vector<16x1xf32>
    %19 = vector.broadcast %18 : vector<16x1xf32> to vector<16x128xf32>
    %20 = arith.subf %14, %19 : vector<16x128xf32>
    %cst_7 = arith.constant 0.000000e+00 : f32
    %21 = vector.broadcast %cst_7 : f32 to vector<16x128xf32>
    %22 = arith.select %10, %20, %21 : vector<16x128xi1>, vector<16x128xf32>
    %23 = arith.mulf %22, %22 : vector<16x128xf32>
    %cst_8 = arith.constant dense<0.000000e+00> : vector<16xf32>
    %24 = vector.multi_reduction <add>, %23, %cst_8 [1] : vector<16x128xf32> to vector<16xf32>
    %25 = vector.shape_cast %24 : vector<16xf32> to vector<16x1xf32>
    %cst_9 = arith.constant 3.125000e-02 : f32
    %26 = vector.broadcast %cst_9 : f32 to vector<16x1xf32>
    %27 = arith.mulf %25, %26 : vector<16x1xf32>
    %cst_10 = arith.constant 9.99999974E-6 : f32
    %28 = vector.broadcast %cst_10 : f32 to vector<16x1xf32>
    %29 = arith.addf %27, %28 : vector<16x1xf32>
    %30 = math.rsqrt %29 : vector<16x1xf32>
    %31 = vector.broadcast %30 : vector<16x1xf32> to vector<16x128xf32>
    %32 = arith.mulf %22, %31 : vector<16x128xf32>
    %33 = vector.broadcast %3 : vector<1x128xf32> to vector<16x128xf32>
    %34 = arith.mulf %32, %33 : vector<16x128xf32>
    %35 = vector.broadcast %4 : vector<1x128xf32> to vector<16x128xf32>
    %36 = arith.addf %34, %35 : vector<16x128xf32>
    %cst_11 = arith.constant 0.000000e+00 : f32
    %37 = vector.broadcast %cst_11 : f32 to vector<16x128xf32>
    %38 = arith.cmpf oge, %36, %37 : vector<16x128xf32>
    %cst_12 = arith.constant 0.00999999977 : f32
    %39 = vector.broadcast %cst_12 : f32 to vector<16x128xf32>
    %40 = arith.mulf %39, %36 : vector<16x128xf32>
    %41 = arith.select %38, %36, %40 : vector<16x128xi1>, vector<16x128xf32>
    %c0_13 = arith.constant 0 : index
    %c0_14 = arith.constant 0 : index
    %42 = vector.load %arg3[%c0_13, %c0_14] : memref<128x128xf32, #tpu.memory_space<vmem>>, vector<128x128xf32>
    %cst_15 = arith.constant dense<0.000000e+00> : vector<16x128xf32>
    %43 = tpu.matmul %41, %42, %cst_15 {dimension_numbers = #tpu.dot_dimension_numbers<[1], [0], [0], [1], [0, 0, 1, 1], [], []>} : vector<16x128xf32>, vector<128x128xf32>, vector<16x128xf32> -> vector<16x128xf32>
    %44 = vector.broadcast %5 : vector<1x128xf32> to vector<16x128xf32>
    %45 = arith.addf %43, %44 : vector<16x128xf32>
    %cst_16 = arith.constant dense<0.000000e+00> : vector<16xf32>
    %46 = vector.multi_reduction <add>, %45, %cst_16 [1] : vector<16x128xf32> to vector<16xf32>
    %47 = vector.shape_cast %46 : vector<16xf32> to vector<16x1xf32>
    %cst_17 = arith.constant 3.125000e-02 : f32
    %48 = vector.broadcast %cst_17 : f32 to vector<16x1xf32>
    %49 = arith.mulf %47, %48 : vector<16x1xf32>
    %50 = vector.broadcast %49 : vector<16x1xf32> to vector<16x128xf32>
    %51 = arith.subf %45, %50 : vector<16x128xf32>
    %cst_18 = arith.constant 0.000000e+00 : f32
    %52 = vector.broadcast %cst_18 : f32 to vector<16x128xf32>
    %53 = arith.select %10, %51, %52 : vector<16x128xi1>, vector<16x128xf32>
    %54 = arith.mulf %53, %53 : vector<16x128xf32>
    %cst_19 = arith.constant dense<0.000000e+00> : vector<16xf32>
    %55 = vector.multi_reduction <add>, %54, %cst_19 [1] : vector<16x128xf32> to vector<16xf32>
    %56 = vector.shape_cast %55 : vector<16xf32> to vector<16x1xf32>
    %cst_20 = arith.constant 3.125000e-02 : f32
    %57 = vector.broadcast %cst_20 : f32 to vector<16x1xf32>
    %58 = arith.mulf %56, %57 : vector<16x1xf32>
    %cst_21 = arith.constant 9.99999974E-6 : f32
    %59 = vector.broadcast %cst_21 : f32 to vector<16x1xf32>
    %60 = arith.addf %58, %59 : vector<16x1xf32>
    %61 = math.rsqrt %60 : vector<16x1xf32>
    %62 = vector.broadcast %61 : vector<16x1xf32> to vector<16x128xf32>
    %63 = arith.mulf %53, %62 : vector<16x128xf32>
    %64 = vector.broadcast %6 : vector<1x128xf32> to vector<16x128xf32>
    %65 = arith.mulf %63, %64 : vector<16x128xf32>
    %66 = vector.broadcast %7 : vector<1x128xf32> to vector<16x128xf32>
    %67 = arith.addf %65, %66 : vector<16x128xf32>
    %cst_22 = arith.constant 0.000000e+00 : f32
    %68 = vector.broadcast %cst_22 : f32 to vector<16x128xf32>
    %69 = arith.cmpf oge, %67, %68 : vector<16x128xf32>
    %cst_23 = arith.constant 0.00999999977 : f32
    %70 = vector.broadcast %cst_23 : f32 to vector<16x128xf32>
    %71 = arith.mulf %70, %67 : vector<16x128xf32>
    %72 = arith.select %69, %67, %71 : vector<16x128xi1>, vector<16x128xf32>
    %c0_24 = arith.constant 0 : index
    %c0_25 = arith.constant 0 : index
    %73 = vector.load %arg4[%c0_24, %c0_25] : memref<128x8xf32, #tpu.memory_space<vmem>>, vector<128x8xf32>
    %cst_26 = arith.constant dense<0.000000e+00> : vector<16x8xf32>
    %74 = tpu.matmul %72, %73, %cst_26 {dimension_numbers = #tpu.dot_dimension_numbers<[1], [0], [0], [1], [0, 0, 1, 1], [], []>} : vector<16x128xf32>, vector<128x8xf32>, vector<16x8xf32> -> vector<16x8xf32>
    %c0_27 = arith.constant 0 : index
    %c0_28 = arith.constant 0 : index
    %75 = vector.load %arg6[%c0_27, %c0_28] : memref<1x8xf32, #tpu.memory_space<vmem>>, vector<1x8xf32>
    %76 = vector.broadcast %75 : vector<1x8xf32> to vector<16x8xf32>
    %77 = arith.addf %74, %76 : vector<16x8xf32>
    %c0_29 = arith.constant 0 : index
    %c0_30 = arith.constant 0 : index
    %78 = vector.load %arg7[%c0_29, %c0_30] : memref<16x8xf32, #tpu.memory_space<vmem>>, vector<16x8xf32>
    tpu.vector_store %arg7[%c0_29, %c0_30], %77 {strides = array<i32>} : memref<16x8xf32, #tpu.memory_space<vmem>>, vector<16x8xf32>,
    return
  }
  func.func @transform_0(%arg0: i32) -> (i32, i32) {
    %c0_i32 = arith.constant 0 : i32
    %c0_i32_0 = arith.constant 0 : i32
    return %arg0, %c0_i32 : i32, i32
  }
  func.func @transform_1(%arg0: i32) -> (i32, i32) {
    %c0_i32 = arith.constant 0 : i32
    %c0_i32_0 = arith.constant 0 : i32
    %c0_i32_1 = arith.constant 0 : i32
    return %c0_i32, %c0_i32_0 : i32, i32
  }
  func.func @transform_2(%arg0: i32) -> (i32, i32) {
    %c0_i32 = arith.constant 0 : i32
    %c0_i32_0 = arith.constant 0 : i32
    %c0_i32_1 = arith.constant 0 : i32
    return %c0_i32, %c0_i32_0 : i32, i32
  }
  func.func @transform_3(%arg0: i32) -> (i32, i32) {
    %c0_i32 = arith.constant 0 : i32
    %c0_i32_0 = arith.constant 0 : i32
    %c0_i32_1 = arith.constant 0 : i32
    return %c0_i32, %c0_i32_0 : i32, i32
  }
  func.func @transform_4(%arg0: i32) -> (i32, i32) {
    %c0_i32 = arith.constant 0 : i32
    %c0_i32_0 = arith.constant 0 : i32
    %c0_i32_1 = arith.constant 0 : i32
    return %c0_i32, %c0_i32_0 : i32, i32
  }
  func.func @transform_5(%arg0: i32) -> (i32, i32) {
    %c0_i32 = arith.constant 0 : i32
    %c0_i32_0 = arith.constant 0 : i32
    %c0_i32_1 = arith.constant 0 : i32
    return %c0_i32, %c0_i32_0 : i32, i32
  }
  func.func @transform_6(%arg0: i32) -> (i32, i32) {
    %c0_i32 = arith.constant 0 : i32
    %c0_i32_0 = arith.constant 0 : i32
    return %arg0, %c0_i32 : i32, i32
  }
}

</mosaic_0001>

<bundles_post_ra>
// kernel: tpu_custom_call.1
= control target key start
LH: loop header
LB: loop body
LE: loop exit
PB: predicated region body
PF: predicated region fallthrough
CT: control target
= control target key end

     0   :  { %11 = vsyncpa [#allocation3], 0  ;;  %s585_s0 = inlined_call_operand.hbm [shape: f32[16,16], index: 0, kind: input, shape index: {}]   ;;  %s586_s1 = inlined_call_operand.hbm [shape: f32[16,128], index: 1, kind: input, shape index: {}]   ;;  %s587_s2 = inlined_call_operand.vmem [shape: f32[128,128], index: 2, kind: input, shape index: {}]   ;;  %s588_s3 = inlined_call_operand.vmem [shape: f32[128,8], index: 3, kind: input, shape index: {}]   ;;  %s589_s4 = inlined_call_operand.vmem [shape: f32[8,128], index: 4, kind: input, shape index: {}]   ;;  %s590_s5 = inlined_call_operand.vmem [shape: f32[1,8], index: 5, kind: input, shape index: {}]   ;;  %s591_s6 = inlined_call_operand.vmem [shape: f32[16,8], index: 6, kind: output, shape index: {}]  }
   0x1   :  { %s17_s23 = sshll.u32 %s585_s0, 4  ;;  %s18_s23 = int_to_ptr.hbm [resolvable:$true] %s17_s23 }
   0x2   :  { %12 = vsyncpa [#allocation5], 0  ;;  %s393_s24 = smov [#allocation2]   ;;  %s30_s28 = sshll.u32 %s586_s1, 4  ;;  %s31_s28 = int_to_ptr.hbm [resolvable:$true] %s30_s28 }
   0x3   :  { %s19_s25 = sshll.u32 %s393_s24, 4  ;;  %s394_s29 = smov 128   ;;  %s20_s25 = int_to_ptr.vmem [resolvable:$true] %s19_s25 }
   0x4   :  { %s395_s30 = smov 8   ;;  %s396_s7 = smov [#allocation4]  }
   0x5   :  { %25 = dma.hbm_to_vmem [thread:$0]  %s18_s23, 256, %s20_s25, [#allocation3], %s394_s29, %s394_s29, %s395_s30  }
   0x6   :  { %s32_s8 = sshll.u32 %s396_s7, 4  ;;  %s33_s8 = int_to_ptr.vmem [resolvable:$true] %s32_s8 }
   0x7   :  { %38 = dma.hbm_to_vmem [thread:$0]  %s31_s28, 256, %s33_s8, [#allocation5], %s394_s29, %s394_s29, %s395_s30  }
   0x8   :  { %389 = dma.done.wait [#allocation3], 256  }
   0x9   :  { %390 = vsyncadd [#allocation3], 4294967040 }
   0xa   :  { %391 = dma.done.wait [#allocation5], 256  }
   0xb   :  { %392 = vsyncadd [#allocation5], 4294967040  ;;  %v62_v0 = vld [vmem:[#allocation4 + $0x8] sm:$0xff]  ;;  %v61_v1 = vld [vmem:[#allocation4] sm:$0xff]  ;;  %vm64_vm0 = vcmask 130048   ;;  %v58_v10 = vlaneseq }
   0xc   :  { %85 = vmatpush.msra.mxu0 %v62_v0  ;;  %v55_v2 = vld [vmem:[#allocation2] sm:$0xff]  ;;  %v56_v3 = vld [vmem:[#allocation2 + $0x8] sm:$0xff]  ;;  %v163_v22 = vld [vmem:[%s587_s2 + $0x78] sm:$0xff] }
   0xd   :  { %v441_v5 = vld [vmem:[%s589_s4] sm:$0xff]  ;;  %v444_v11 = vand.u32 127, %v58_v10  ;;  %296 = vmatpush.msra.mxu3 %v163_v22  ;;  %165 = vmatpush.msra.mxu1 %v163_v22  ;;  %v162_v23 = vld [vmem:[%s587_s2 + $0x70] sm:$0xff]  ;;  %v161_v24 = vld [vmem:[%s587_s2 + $0x68] sm:$0xff] }
   0xe   :  { %86 = vmatpush.msra.mxu0 %v61_v1  ;;  %v63_v6 = vperm.slane %v441_v5, 0  ;;  %v160_v25 = vld [vmem:[%s587_s2 + $0x60] sm:$0xff]  ;;  %v159_v26 = vld [vmem:[%s587_s2 + $0x58] sm:$0xff]  ;;  %v158_v27 = vld [vmem:[%s587_s2 + $0x50] sm:$0xff]  ;;  %v136_v52 = vperm.slane %v441_v5, 1  ;;  %v139_v56 = vperm.slane %v441_v5, 2 }
   0xf   :  { %294 = vmatmul.msk.f32.vlgmr.msra.gmra.mxu0 %vm64_vm0, %v55_v2  ;;  %vm60_vm1 = vcmp.lt.s32.totalorder %v444_v11, 32  ;;  %297 = vmatpush.msra.mxu3 %v162_v23  ;;  %v157_v28 = vld [vmem:[%s587_s2 + $0x48] sm:$0xff]  ;;  %v156_v29 = vld [vmem:[%s587_s2 + $0x40] sm:$0xff]  ;;  %v155_v30 = vld [vmem:[%s587_s2 + $0x38] sm:$0xff] }
  0x10   :  { %166 = vmatpush.msra.mxu1 %v162_v23  ;;  %v154_v31 = vld [vmem:[%s587_s2 + $0x30] sm:$0xff]  ;;  %v153_v32 = vld [vmem:[%s587_s2 + $0x28] sm:$0xff]  ;;  %v152_v33 = vld [vmem:[%s587_s2 + $0x20] sm:$0xff] }
  0x11   :  { %298 = vmatpush.msra.mxu3 %v161_v24  ;;  %v151_v34 = vld [vmem:[%s587_s2 + $0x18] sm:$0xff]  ;;  %v150_v35 = vld [vmem:[%s587_s2 + $0x10] sm:$0xff]  ;;  %v149_v36 = vld [vmem:[%s587_s2 + $0x8] sm:$0xff] }
  0x12   :  { %167 = vmatpush.msra.mxu1 %v161_v24  ;;  %v148_v37 = vld [vmem:[%s587_s2] sm:$0xff]  ;;  %v257_v23 = vld [vmem:[%s588_s3 + $0x78] sm:$0xff]  ;;  %v256_v24 = vld [vmem:[%s588_s3 + $0x70] sm:$0xff] }
  0x13   :  { %299 = vmatpush.msra.mxu3 %v160_v25  ;;  %312 = vmatpush.msra.mxu2 %v257_v23  ;;  %v255_v11 = vld [vmem:[%s588_s3 + $0x68] sm:$0xff] }
  0x14   :  { %168 = vmatpush.msra.mxu1 %v160_v25  ;;  %262 = vmatpush.msrb.mxu0 %v257_v23  ;;  %v254_v25 = vld [vmem:[%s588_s3 + $0x60] sm:$0xff] }
  0x15   :  { %300 = vmatpush.msra.mxu3 %v159_v26  ;;  %313 = vmatpush.msra.mxu2 %v256_v24 }
  0x16   :  { %169 = vmatpush.msra.mxu1 %v159_v26  ;;  %263 = vmatpush.msrb.mxu0 %v256_v24  ;;  %v253_v26 = vld [vmem:[%s588_s3 + $0x58] sm:$0xff] }
  0x17   :  { %295 = vmatmul.msk.f32.gmra.mxu0 %vm64_vm0, %v56_v3  ;;  %301 = vmatpush.msra.mxu3 %v158_v27 }
  0x18   :  { %170 = vmatpush.msra.mxu1 %v158_v27  ;;  %314 = vmatpush.msra.mxu2 %v255_v11  ;;  %v252_v27 = vld [vmem:[%s588_s3 + $0x50] sm:$0xff] }
  0x19   :  { %302 = vmatpush.msra.mxu3 %v157_v28  ;;  %264 = vmatpush.msrb.mxu0 %v255_v11 }
  0x1a   :  { %171 = vmatpush.msra.mxu1 %v157_v28  ;;  %315 = vmatpush.msra.mxu2 %v254_v25  ;;  %v251_v28 = vld [vmem:[%s588_s3 + $0x48] sm:$0xff] }
  0x1b   :  { %303 = vmatpush.msra.mxu3 %v156_v29  ;;  %265 = vmatpush.msrb.mxu0 %v254_v25 }
  0x1c   :  { %172 = vmatpush.msra.mxu1 %v156_v29  ;;  %316 = vmatpush.msra.mxu2 %v253_v26  ;;  %v250_v29 = vld [vmem:[%s588_s3 + $0x40] sm:$0xff] }
  0x1d   :  { %304 = vmatpush.msra.mxu3 %v155_v30  ;;  %266 = vmatpush.msrb.mxu0 %v253_v26 }
  0x1e   :  { %173 = vmatpush.msra.mxu1 %v155_v30  ;;  %317 = vmatpush.msra.mxu2 %v252_v27  ;;  %v249_v30 = vld [vmem:[%s588_s3 + $0x38] sm:$0xff] }
  0x1f   :  { %305 = vmatpush.msra.mxu3 %v154_v31  ;;  %267 = vmatpush.msrb.mxu0 %v252_v27 }
  0x20   :  { %174 = vmatpush.msra.mxu1 %v154_v31  ;;  %318 = vmatpush.msra.mxu2 %v251_v28  ;;  %v248_v31 = vld [vmem:[%s588_s3 + $0x30] sm:$0xff] }
  0x21   :  { %306 = vmatpush.msra.mxu3 %v153_v32  ;;  %268 = vmatpush.msrb.mxu0 %v251_v28 }
  0x22   :  { %175 = vmatpush.msra.mxu1 %v153_v32  ;;  %319 = vmatpush.msra.mxu2 %v250_v29  ;;  %v247_v32 = vld [vmem:[%s588_s3 + $0x28] sm:$0xff] }
  0x23   :  { %307 = vmatpush.msra.mxu3 %v152_v33  ;;  %269 = vmatpush.msrb.mxu0 %v250_v29 }
  0x24   :  { %176 = vmatpush.msra.mxu1 %v152_v33  ;;  %320 = vmatpush.msra.mxu2 %v249_v30  ;;  %v246_v33 = vld [vmem:[%s588_s3 + $0x20] sm:$0xff] }
  0x25   :  { %308 = vmatpush.msra.mxu3 %v151_v34  ;;  %270 = vmatpush.msrb.mxu0 %v249_v30 }
  0x26   :  { %177 = vmatpush.msra.mxu1 %v151_v34  ;;  %321 = vmatpush.msra.mxu2 %v248_v31  ;;  %v245_v34 = vld [vmem:[%s588_s3 + $0x18] sm:$0xff] }
  0x27   :  { %309 = vmatpush.msra.mxu3 %v150_v35  ;;  %271 = vmatpush.msrb.mxu0 %v248_v31 }
  0x28   :  { %178 = vmatpush.msra.mxu1 %v150_v35  ;;  %322 = vmatpush.msra.mxu2 %v247_v32  ;;  %v244_v35 = vld [vmem:[%s588_s3 + $0x10] sm:$0xff] }
  0x29   :  { %310 = vmatpush.msra.mxu3 %v149_v36  ;;  %272 = vmatpush.msrb.mxu0 %v247_v32 }
  0x2a   :  { %179 = vmatpush.msra.mxu1 %v149_v36  ;;  %323 = vmatpush.msra.mxu2 %v246_v33  ;;  %v243_v36 = vld [vmem:[%s588_s3 + $0x8] sm:$0xff] }
  0x2b   :  { %311 = vmatpush.msra.mxu3 %v148_v37  ;;  %273 = vmatpush.msrb.mxu0 %v246_v33 }
  0x2c   :  { %180 = vmatpush.msra.mxu1 %v148_v37  ;;  %324 = vmatpush.msra.mxu2 %v245_v34  ;;  %v242_v37 = vld [vmem:[%s588_s3] sm:$0xff] }
  0x2d   :  { %274 = vmatpush.msrb.mxu0 %v245_v34 }
  0x2e   :  { %325 = vmatpush.msra.mxu2 %v244_v35 }
  0x2f   :  { %275 = vmatpush.msrb.mxu0 %v244_v35 }
  0x30   :  { %326 = vmatpush.msra.mxu2 %v243_v36 }
  0x31   :  { %276 = vmatpush.msrb.mxu0 %v243_v36 }
  0x32   :  { %327 = vmatpush.msra.mxu2 %v242_v37 }
  0x33   :  { %277 = vmatpush.msrb.mxu0 %v242_v37 }
  0x8c   :  { %v88_v4 = vpop.f32.mrf.mxu0 }
  0x8d   :  { %v89_v9 = vadd.f32 %v88_v4, %v63_v6 }
  0x94   :  { %v91_v7 = vpop.f32.mrf.mxu0 }
  0x95   :  { %v92_v8 = vadd.f32 %v91_v7, %v63_v6  ;;  %v164_v7 = vperm.slane %v441_v5, 3 }
  0x97   :  { %96 = vadd.xlane.f32.xlu0 %v92_v8 }
  0x9f   :  { %94 = vadd.xlane.f32.xlu0 %v89_v9 }
 0x10a   :  { %v97_v12 = vpop.xlane.xlu0 %96 }
 0x10b   :  { %v99_v13 = vmul.f32 0.03125, %v97_v12 }
 0x10d   :  { %v101_v14 = vsub.f32 %v92_v8, %v99_v13 }
 0x10f   :  { %v449_v15 = vsel %vm60_vm1, %v101_v14, 0.0 }
 0x110   :  { %v105_v16 = vmul.f32 %v449_v15, %v449_v15 }
 0x112   :  { %108 = vadd.xlane.f32.xlu1 %v105_v16  ;;  %v95_v17 = vpop.xlane.xlu0 %94 }
 0x113   :  { %v98_v18 = vmul.f32 0.03125, %v95_v17 }
 0x115   :  { %v100_v19 = vsub.f32 %v89_v9, %v98_v18 }
 0x117   :  { %v455_v20 = vsel %vm60_vm1, %v100_v19, 0.0 }
 0x118   :  { %v104_v21 = vmul.f32 %v455_v20, %v455_v20 }
 0x11a   :  { %106 = vadd.xlane.f32.xlu1 %v104_v21 }
 0x185   :  { %v109_v38 = vpop.xlane.xlu1 %108 }
 0x186   :  { %v111_v39 = vmul.f32 0.03125, %v109_v38 }
 0x188   :  { %v113_v40 = vadd.f32 1e-05, %v111_v39 }
 0x18a   :  { %333 = vrsqrt.f32 %v113_v40  ;;  %vm130_vm3 = vweird.f32 %v113_v40 }
 0x18d   :  { %v107_v41 = vpop.xlane.xlu1 %106 }
 0x18e   :  { %v110_v42 = vmul.f32 0.03125, %v107_v41 }
 0x190   :  { %v334_v43 = vpop.eup %333  ;;  %v112_v44 = vadd.f32 1e-05, %v110_v42 }
 0x191   :  { %v125_v45 = vmul.f32 %v334_v43, %v113_v40  ;;  %vm131_vm2 = vweird.f32 %v334_v43 }
 0x192   :  { %335 = vrsqrt.f32 %v112_v44  ;;  %vm132_vm4 = vmor %vm130_vm3, %vm131_vm2  ;;  %vm120_vm6 = vweird.f32 %v112_v44  ;;  %vm285_vm2 = vcmask 64512  }
 0x193   :  { %v126_v46 = vmul.f32 %v334_v43, %v125_v45 }
 0x195   :  { %v127_v47 = vmul.f32 0.5, %v126_v46 }
 0x197   :  { %v128_v48 = vsub.f32 1.5, %v127_v47 }
 0x198   :  { %v336_v49 = vpop.eup %335 }
 0x199   :  { %v129_v50 = vmul.f32 %v334_v43, %v128_v48  ;;  %v115_v51 = vmul.f32 %v336_v49, %v112_v44  ;;  %vm121_vm5 = vweird.f32 %v336_v49 }
 0x19a   :  { %vm122_vm7 = vmor %vm120_vm6, %vm121_vm5 }
 0x19b   :  { %v133_v53 = vsel %vm132_vm4, %v334_v43, %v129_v50  ;;  %v116_v54 = vmul.f32 %v336_v49, %v115_v51 }
 0x19c   :  { %v135_v55 = vmul.f32 %v133_v53, %v449_v15 }
 0x19d   :  { %v117_v57 = vmul.f32 0.5, %v116_v54 }
 0x19e   :  { %v138_v58 = vmul.f32 %v136_v52, %v135_v55 }
 0x19f   :  { %v118_v59 = vsub.f32 1.5, %v117_v57 }
 0x1a0   :  { %v141_v60 = vadd.f32 %v139_v56, %v138_v58 }
 0x1a1   :  { %v119_v61 = vmul.f32 %v336_v49, %v118_v59 }
 0x1a2   :  { %vm143_vm8 = vcmp.ge.f32.partialorder %v141_v60, 0.0  ;;  %v145_v62 = vmul.f32 0.01, %v141_v60 }
 0x1a3   :  { %v123_v63 = vsel %vm122_vm7, %v336_v49, %v119_v61 }
 0x1a4   :  { %v147_v0 = vsel %vm143_vm8, %v141_v60, %v145_v62  ;;  %v134_v1 = vmul.f32 %v123_v63, %v455_v20 }
 0x1a5   :  { %184 = vmatmul.f32.vlgmr.msra.gmra.mxu3 %v147_v0 }
 0x1a6   :  { %v137_v2 = vmul.f32 %v136_v52, %v134_v1  ;;  %v230_v52 = vperm.slane %v441_v5, 4 }
 0x1a8   :  { %v140_v3 = vadd.f32 %v139_v56, %v137_v2  ;;  %v233_v56 = vperm.slane %v441_v5, 5 }
 0x1aa   :  { %vm142_vm9 = vcmp.ge.f32.partialorder %v140_v3, 0.0  ;;  %v144_v4 = vmul.f32 0.01, %v140_v3 }
 0x1ac   :  { %v146_v6 = vsel %vm142_vm9, %v140_v3, %v144_v4 }
 0x1ad   :  { %181 = vmatmul.f32.vlgmr.msra.gmra.mxu1 %v146_v6  ;;  %v332_v6 = vld [vmem:[%s590_s5] ss:$0 sm:$0xff] }
 0x228   :  { %v185_v8 = vpop.f32.mrf.mxu3 }
 0x229   :  { %v186_v9 = vadd.f32 %v185_v8, %v164_v7 }
 0x22a   :  { %v182_v10 = vpop.f32.mrf.mxu1 }
 0x22b   :  { %190 = vadd.xlane.f32.xlu2 %v186_v9  ;;  %v183_v12 = vadd.f32 %v182_v10, %v164_v7 }
 0x233   :  { %188 = vadd.xlane.f32.xlu2 %v183_v12 }
 0x29e   :  { %v191_v13 = vpop.xlane.xlu2 %190 }
 0x29f   :  { %v193_v14 = vmul.f32 0.03125, %v191_v13 }
 0x2a1   :  { %v195_v15 = vsub.f32 %v186_v9, %v193_v14 }
 0x2a3   :  { %v514_v16 = vsel %vm60_vm1, %v195_v15, 0.0 }
 0x2a4   :  { %v199_v17 = vmul.f32 %v514_v16, %v514_v16 }
 0x2a6   :  { %202 = vadd.xlane.f32.xlu0 %v199_v17  ;;  %v189_v18 = vpop.xlane.xlu2 %188 }
 0x2a7   :  { %v192_v19 = vmul.f32 0.03125, %v189_v18 }
 0x2a9   :  { %v194_v20 = vsub.f32 %v183_v12, %v192_v19 }
 0x2ab   :  { %v520_v21 = vsel %vm60_vm1, %v194_v20, 0.0 }
 0x2ac   :  { %v198_v22 = vmul.f32 %v520_v21, %v520_v21 }
 0x2ae   :  { %200 = vadd.xlane.f32.xlu1 %v198_v22 }
 0x319   :  { %v203_v38 = vpop.xlane.xlu0 %202 }
 0x31a   :  { %v205_v39 = vmul.f32 0.03125, %v203_v38 }
 0x31c   :  { %v207_v40 = vadd.f32 1e-05, %v205_v39 }
 0x31e   :  { %337 = vrsqrt.f32 %v207_v40  ;;  %vm224_vm11 = vweird.f32 %v207_v40 }
 0x321   :  { %v201_v41 = vpop.xlane.xlu1 %200 }
 0x322   :  { %v204_v42 = vmul.f32 0.03125, %v201_v41 }
 0x324   :  { %v338_v43 = vpop.eup %337  ;;  %v206_v44 = vadd.f32 1e-05, %v204_v42 }
 0x325   :  { %v219_v45 = vmul.f32 %v338_v43, %v207_v40  ;;  %vm225_vm10 = vweird.f32 %v338_v43 }
 0x326   :  { %339 = vrsqrt.f32 %v206_v44  ;;  %vm226_vm12 = vmor %vm224_vm11, %vm225_vm10  ;;  %vm214_vm14 = vweird.f32 %v206_v44 }
 0x327   :  { %v220_v46 = vmul.f32 %v338_v43, %v219_v45 }
 0x329   :  { %v221_v47 = vmul.f32 0.5, %v220_v46 }
 0x32b   :  { %v222_v48 = vsub.f32 1.5, %v221_v47 }
 0x32c   :  { %v340_v49 = vpop.eup %339 }
 0x32d   :  { %v223_v50 = vmul.f32 %v338_v43, %v222_v48  ;;  %v209_v51 = vmul.f32 %v340_v49, %v206_v44  ;;  %vm215_vm13 = vweird.f32 %v340_v49 }
 0x32e   :  { %vm216_vm15 = vmor %vm214_vm14, %vm215_vm13 }
 0x32f   :  { %v227_v53 = vsel %vm226_vm12, %v338_v43, %v223_v50  ;;  %v210_v54 = vmul.f32 %v340_v49, %v209_v51 }
 0x330   :  { %v229_v55 = vmul.f32 %v227_v53, %v514_v16 }
 0x331   :  { %v211_v57 = vmul.f32 0.5, %v210_v54 }
 0x332   :  { %v232_v58 = vmul.f32 %v230_v52, %v229_v55 }
 0x333   :  { %v212_v59 = vsub.f32 1.5, %v211_v57 }
 0x334   :  { %v235_v60 = vadd.f32 %v233_v56, %v232_v58 }
 0x335   :  { %v213_v61 = vmul.f32 %v340_v49, %v212_v59 }
 0x336   :  { %vm237_vm0 = vcmp.ge.f32.partialorder %v235_v60, 0.0  ;;  %v239_v62 = vmul.f32 0.01, %v235_v60 }
 0x337   :  { %v217_v63 = vsel %vm216_vm15, %v340_v49, %v213_v61 }
 0x338   :  { %v228_v0 = vmul.f32 %v217_v63, %v520_v21  ;;  %v241_v1 = vsel %vm237_vm0, %v235_v60, %v239_v62 }
 0x339   :  { %281 = vmatmul.f32.vlgmr.msra.gmra.mxu2 %v241_v1 }
 0x33a   :  { %v231_v2 = vmul.f32 %v230_v52, %v228_v0 }
 0x33c   :  { %v234_v3 = vadd.f32 %v233_v56, %v231_v2 }
 0x33e   :  { %vm236_vm1 = vcmp.ge.f32.partialorder %v234_v3, 0.0  ;;  %v238_v4 = vmul.f32 0.01, %v234_v3 }
 0x340   :  { %v240_v5 = vsel %vm236_vm1, %v234_v3, %v238_v4 }
 0x341   :  { %278 = vmatmul.f32.vlgmr.msrb.gmra.mxu0 %v240_v5 }
 0x3bc   :  { %v282_v7 = vpop.f32.mrf.mxu2 }
 0x3bd   :  { %v283_v8 = vadd.f32 %v332_v6, %v282_v7 }
 0x3be   :  { %v279_v9 = vpop.f32.mrf.mxu0 }
 0x3bf   :  { %287 = vst.msk [vmem:[%s591_s6 + $0x8] sm:$0xff] %vm285_vm2, %v283_v8  ;;  %v280_v10 = vadd.f32 %v332_v6, %v279_v9 }
 0x3c1   :  { %286 = vst.msk [vmem:[%s591_s6] sm:$0xff] %vm285_vm2, %v280_v10 }
 0x3c2   :  { %292 = vsyncpa [#allocation3], 1 }
 0x3c3   :  { %293 = vsyncpa [#allocation5], 1 }

// kernel: tpu_custom_call.1
= control target key start
LH: loop header
LB: loop body
LE: loop exit
PB: predicated region body
PF: predicated region fallthrough
CT: control target
= control target key end

     0   :  { %11 = vsyncpa [#allocation3], 0  ;;  %s585_s0 = inlined_call_operand.hbm [shape: f32[16,16], index: 0, kind: input, shape index: {}]   ;;  %s586_s1 = inlined_call_operand.hbm [shape: f32[16,128], index: 1, kind: input, shape index: {}]   ;;  %s587_s2 = inlined_call_operand.vmem [shape: f32[128,128], index: 2, kind: input, shape index: {}]   ;;  %s588_s3 = inlined_call_operand.vmem [shape: f32[128,8], index: 3, kind: input, shape index: {}]   ;;  %s589_s4 = inlined_call_operand.vmem [shape: f32[8,128], index: 4, kind: input, shape index: {}]   ;;  %s590_s5 = inlined_call_operand.vmem [shape: f32[1,8], index: 5, kind: input, shape index: {}]   ;;  %s591_s6 = inlined_call_operand.vmem [shape: f32[16,8], index: 6, kind: output, shape index: {}]  }
   0x1   :  { %s17_s23 = sshll.u32 %s585_s0, 4  ;;  %s18_s23 = int_to_ptr.hbm [resolvable:$true] %s17_s23 }
   0x2   :  { %12 = vsyncpa [#allocation5], 0  ;;  %s393_s24 = smov [#allocation2]   ;;  %s30_s28 = sshll.u32 %s586_s1, 4  ;;  %s31_s28 = int_to_ptr.hbm [resolvable:$true] %s30_s28 }
   0x3   :  { %s19_s25 = sshll.u32 %s393_s24, 4  ;;  %s394_s29 = smov 128   ;;  %s20_s25 = int_to_ptr.vmem [resolvable:$true] %s19_s25 }
   0x4   :  { %s395_s30 = smov 8   ;;  %s396_s7 = smov [#allocation4]  }
   0x5   :  { %25 = dma.hbm_to_vmem [thread:$0]  %s18_s23, 256, %s20_s25, [#allocation3], %s394_s29, %s394_s29, %s395_s30  }
   0x6   :  { %s32_s8 = sshll.u32 %s396_s7, 4  ;;  %s33_s8 = int_to_ptr.vmem [resolvable:$true] %s32_s8 }
   0x7   :  { %38 = dma.hbm_to_vmem [thread:$0]  %s31_s28, 256, %s33_s8, [#allocation5], %s394_s29, %s394_s29, %s395_s30  }
   0x8   :  { %389 = dma.done.wait [#allocation3], 256  }
   0x9   :  { %390 = vsyncadd [#allocation3], 4294967040 }
   0xa   :  { %391 = dma.done.wait [#allocation5], 256  }
   0xb   :  { %392 = vsyncadd [#allocation5], 4294967040  ;;  %v62_v0 = vld [vmem:[#allocation4 + $0x8] sm:$0xff]  ;;  %v61_v1 = vld [vmem:[#allocation4] sm:$0xff]  ;;  %vm64_vm0 = vcmask 130048   ;;  %v58_v10 = vlaneseq }
   0xc   :  { %85 = vmatpush.msra.mxu0 %v62_v0  ;;  %v55_v2 = vld [vmem:[#allocation2] sm:$0xff]  ;;  %v56_v3 = vld [vmem:[#allocation2 + $0x8] sm:$0xff]  ;;  %v163_v22 = vld [vmem:[%s587_s2 + $0x78] sm:$0xff] }
   0xd   :  { %v441_v5 = vld [vmem:[%s589_s4] sm:$0xff]  ;;  %v444_v11 = vand.u32 127, %v58_v10  ;;  %296 = vmatpush.msra.mxu3 %v163_v22  ;;  %165 = vmatpush.msra.mxu1 %v163_v22  ;;  %v162_v23 = vld [vmem:[%s587_s2 + $0x70] sm:$0xff]  ;;  %v161_v24 = vld [vmem:[%s587_s2 + $0x68] sm:$0xff] }
   0xe   :  { %86 = vmatpush.msra.mxu0 %v61_v1  ;;  %v63_v6 = vperm.slane %v441_v5, 0  ;;  %v160_v25 = vld [vmem:[%s587_s2 + $0x60] sm:$0xff]  ;;  %v159_v26 = vld [vmem:[%s587_s2 + $0x58] sm:$0xff]  ;;  %v158_v27 = vld [vmem:[%s587_s2 + $0x50] sm:$0xff]  ;;  %v136_v52 = vperm.slane %v441_v5, 1  ;;  %v139_v56 = vperm.slane %v441_v5, 2 }
   0xf   :  { %294 = vmatmul.msk.f32.vlgmr.msra.gmra.mxu0 %vm64_vm0, %v55_v2  ;;  %vm60_vm1 = vcmp.lt.s32.totalorder %v444_v11, 32  ;;  %297 = vmatpush.msra.mxu3 %v162_v23  ;;  %v157_v28 = vld [vmem:[%s587_s2 + $0x48] sm:$0xff]  ;;  %v156_v29 = vld [vmem:[%s587_s2 + $0x40] sm:$0xff]  ;;  %v155_v30 = vld [vmem:[%s587_s2 + $0x38] sm:$0xff] }
  0x10   :  { %166 = vmatpush.msra.mxu1 %v162_v23  ;;  %v154_v31 = vld [vmem:[%s587_s2 + $0x30] sm:$0xff]  ;;  %v153_v32 = vld [vmem:[%s587_s2 + $0x28] sm:$0xff]  ;;  %v152_v33 = vld [vmem:[%s587_s2 + $0x20] sm:$0xff] }
  0x11   :  { %298 = vmatpush.msra.mxu3 %v161_v24  ;;  %v151_v34 = vld [vmem:[%s587_s2 + $0x18] sm:$0xff]  ;;  %v150_v35 = vld [vmem:[%s587_s2 + $0x10] sm:$0xff]  ;;  %v149_v36 = vld [vmem:[%s587_s2 + $0x8] sm:$0xff] }
  0x12   :  { %167 = vmatpush.msra.mxu1 %v161_v24  ;;  %v148_v37 = vld [vmem:[%s587_s2] sm:$0xff]  ;;  %v257_v23 = vld [vmem:[%s588_s3 + $0x78] sm:$0xff]  ;;  %v256_v24 = vld [vmem:[%s588_s3 + $0x70] sm:$0xff] }
  0x13   :  { %299 = vmatpush.msra.mxu3 %v160_v25  ;;  %312 = vmatpush.msra.mxu2 %v257_v23  ;;  %v255_v11 = vld [vmem:[%s588_s3 + $0x68] sm:$0xff] }
  0x14   :  { %168 = vmatpush.msra.mxu1 %v160_v25  ;;  %262 = vmatpush.msrb.mxu0 %v257_v23  ;;  %v254_v25 = vld [vmem:[%s588_s3 + $0x60] sm:$0xff] }
  0x15   :  { %300 = vmatpush.msra.mxu3 %v159_v26  ;;  %313 = vmatpush.msra.mxu2 %v256_v24 }
  0x16   :  { %169 = vmatpush.msra.mxu1 %v159_v26  ;;  %263 = vmatpush.msrb.mxu0 %v256_v24  ;;  %v253_v26 = vld [vmem:[%s588_s3 + $0x58] sm:$0xff] }
  0x17   :  { %295 = vmatmul.msk.f32.gmra.mxu0 %vm64_vm0, %v56_v3  ;;  %301 = vmatpush.msra.mxu3 %v158_v27 }
  0x18   :  { %170 = vmatpush.msra.mxu1 %v158_v27  ;;  %314 = vmatpush.msra.mxu2 %v255_v11  ;;  %v252_v27 = vld [vmem:[%s588_s3 + $0x50] sm:$0xff] }
  0x19   :  { %302 = vmatpush.msra.mxu3 %v157_v28  ;;  %264 = vmatpush.msrb.mxu0 %v255_v11 }
  0x1a   :  { %171 = vmatpush.msra.mxu1 %v157_v28  ;;  %315 = vmatpush.msra.mxu2 %v254_v25  ;;  %v251_v28 = vld [vmem:[%s588_s3 + $0x48] sm:$0xff] }
  0x1b   :  { %303 = vmatpush.msra.mxu3 %v156_v29  ;;  %265 = vmatpush.msrb.mxu0 %v254_v25 }
  0x1c   :  { %172 = vmatpush.msra.mxu1 %v156_v29  ;;  %316 = vmatpush.msra.mxu2 %v253_v26  ;;  %v250_v29 = vld [vmem:[%s588_s3 + $0x40] sm:$0xff] }
  0x1d   :  { %304 = vmatpush.msra.mxu3 %v155_v30  ;;  %266 = vmatpush.msrb.mxu0 %v253_v26 }
  0x1e   :  { %173 = vmatpush.msra.mxu1 %v155_v30  ;;  %317 = vmatpush.msra.mxu2 %v252_v27  ;;  %v249_v30 = vld [vmem:[%s588_s3 + $0x38] sm:$0xff] }
  0x1f   :  { %305 = vmatpush.msra.mxu3 %v154_v31  ;;  %267 = vmatpush.msrb.mxu0 %v252_v27 }
  0x20   :  { %174 = vmatpush.msra.mxu1 %v154_v31  ;;  %318 = vmatpush.msra.mxu2 %v251_v28  ;;  %v248_v31 = vld [vmem:[%s588_s3 + $0x30] sm:$0xff] }
  0x21   :  { %306 = vmatpush.msra.mxu3 %v153_v32  ;;  %268 = vmatpush.msrb.mxu0 %v251_v28 }
  0x22   :  { %175 = vmatpush.msra.mxu1 %v153_v32  ;;  %319 = vmatpush.msra.mxu2 %v250_v29  ;;  %v247_v32 = vld [vmem:[%s588_s3 + $0x28] sm:$0xff] }
  0x23   :  { %307 = vmatpush.msra.mxu3 %v152_v33  ;;  %269 = vmatpush.msrb.mxu0 %v250_v29 }
  0x24   :  { %176 = vmatpush.msra.mxu1 %v152_v33  ;;  %320 = vmatpush.msra.mxu2 %v249_v30  ;;  %v246_v33 = vld [vmem:[%s588_s3 + $0x20] sm:$0xff] }
  0x25   :  { %308 = vmatpush.msra.mxu3 %v151_v34  ;;  %270 = vmatpush.msrb.mxu0 %v249_v30 }
  0x26   :  { %177 = vmatpush.msra.mxu1 %v151_v34  ;;  %321 = vmatpush.msra.mxu2 %v248_v31  ;;  %v245_v34 = vld [vmem:[%s588_s3 + $0x18] sm:$0xff] }
  0x27   :  { %309 = vmatpush.msra.mxu3 %v150_v35  ;;  %271 = vmatpush.msrb.mxu0 %v248_v31 }
  0x28   :  { %178 = vmatpush.msra.mxu1 %v150_v35  ;;  %322 = vmatpush.msra.mxu2 %v247_v32  ;;  %v244_v35 = vld [vmem:[%s588_s3 + $0x10] sm:$0xff] }
  0x29   :  { %310 = vmatpush.msra.mxu3 %v149_v36  ;;  %272 = vmatpush.msrb.mxu0 %v247_v32 }
  0x2a   :  { %179 = vmatpush.msra.mxu1 %v149_v36  ;;  %323 = vmatpush.msra.mxu2 %v246_v33  ;;  %v243_v36 = vld [vmem:[%s588_s3 + $0x8] sm:$0xff] }
  0x2b   :  { %311 = vmatpush.msra.mxu3 %v148_v37  ;;  %273 = vmatpush.msrb.mxu0 %v246_v33 }
  0x2c   :  { %180 = vmatpush.msra.mxu1 %v148_v37  ;;  %324 = vmatpush.msra.mxu2 %v245_v34  ;;  %v242_v37 = vld [vmem:[%s588_s3] sm:$0xff] }
  0x2d   :  { %274 = vmatpush.msrb.mxu0 %v245_v34 }
  0x2e   :  { %325 = vmatpush.msra.mxu2 %v244_v35 }
  0x2f   :  { %275 = vmatpush.msrb.mxu0 %v244_v35 }
  0x30   :  { %326 = vmatpush.msra.mxu2 %v243_v36 }
  0x31   :  { %276 = vmatpush.msrb.mxu0 %v243_v36 }
  0x32   :  { %327 = vmatpush.msra.mxu2 %v242_v37 }
  0x33   :  { %277 = vmatpush.msrb.mxu0 %v242_v37 }
  0x8c   :  { %v88_v4 = vpop.f32.mrf.mxu0 }
  0x8d   :  { %v89_v9 = vadd.f32 %v88_v4, %v63_v6 }
  0x94   :  { %v91_v7 = vpop.f32.mrf.mxu0 }
  0x95   :  { %v92_v8 = vadd.f32 %v91_v7, %v63_v6  ;;  %v164_v7 = vperm.slane %v441_v5, 3 }
  0x97   :  { %96 = vadd.xlane.f32.xlu0 %v92_v8 }
  0x9f   :  { %94 = vadd.xlane.f32.xlu0 %v89_v9 }
 0x10a   :  { %v97_v12 = vpop.xlane.xlu0 %96 }
 0x10b   :  { %v99_v13 = vmul.f32 0.03125, %v97_v12 }
 0x10d   :  { %v101_v14 = vsub.f32 %v92_v8, %v99_v13 }
 0x10f   :  { %v449_v15 = vsel %vm60_vm1, %v101_v14, 0.0 }
 0x110   :  { %v105_v16 = vmul.f32 %v449_v15, %v449_v15 }
 0x112   :  { %108 = vadd.xlane.f32.xlu1 %v105_v16  ;;  %v95_v17 = vpop.xlane.xlu0 %94 }
 0x113   :  { %v98_v18 = vmul.f32 0.03125, %v95_v17 }
 0x115   :  { %v100_v19 = vsub.f32 %v89_v9, %v98_v18 }
 0x117   :  { %v455_v20 = vsel %vm60_vm1, %v100_v19, 0.0 }
 0x118   :  { %v104_v21 = vmul.f32 %v455_v20, %v455_v20 }
 0x11a   :  { %106 = vadd.xlane.f32.xlu1 %v104_v21 }
 0x185   :  { %v109_v38 = vpop.xlane.xlu1 %108 }
 0x186   :  { %v111_v39 = vmul.f32 0.03125, %v109_v38 }
 0x188   :  { %v113_v40 = vadd.f32 1e-05, %v111_v39 }
 0x18a   :  { %333 = vrsqrt.f32 %v113_v40  ;;  %vm130_vm3 = vweird.f32 %v113_v40 }
 0x18d   :  { %v107_v41 = vpop.xlane.xlu1 %106 }
 0x18e   :  { %v110_v42 = vmul.f32 0.03125, %v107_v41 }
 0x190   :  { %v334_v43 = vpop.eup %333  ;;  %v112_v44 = vadd.f32 1e-05, %v110_v42 }
 0x191   :  { %v125_v45 = vmul.f32 %v334_v43, %v113_v40  ;;  %vm131_vm2 = vweird.f32 %v334_v43 }
 0x192   :  { %335 = vrsqrt.f32 %v112_v44  ;;  %vm132_vm4 = vmor %vm130_vm3, %vm131_vm2  ;;  %vm120_vm6 = vweird.f32 %v112_v44  ;;  %vm285_vm2 = vcmask 64512  }
 0x193   :  { %v126_v46 = vmul.f32 %v334_v43, %v125_v45 }
 0x195   :  { %v127_v47 = vmul.f32 0.5, %v126_v46 }
 0x197   :  { %v128_v48 = vsub.f32 1.5, %v127_v47 }
 0x198   :  { %v336_v49 = vpop.eup %335 }
 0x199   :  { %v129_v50 = vmul.f32 %v334_v43, %v128_v48  ;;  %v115_v51 = vmul.f32 %v336_v49, %v112_v44  ;;  %vm121_vm5 = vweird.f32 %v336_v49 }
 0x19a   :  { %vm122_vm7 = vmor %vm120_vm6, %vm121_vm5 }
 0x19b   :  { %v133_v53 = vsel %vm132_vm4, %v334_v43, %v129_v50  ;;  %v116_v54 = vmul.f32 %v336_v49, %v115_v51 }
 0x19c   :  { %v135_v55 = vmul.f32 %v133_v53, %v449_v15 }
 0x19d   :  { %v117_v57 = vmul.f32 0.5, %v116_v54 }
 0x19e   :  { %v138_v58 = vmul.f32 %v136_v52, %v135_v55 }
 0x19f   :  { %v118_v59 = vsub.f32 1.5, %v117_v57 }
 0x1a0   :  { %v141_v60 = vadd.f32 %v139_v56, %v138_v58 }
 0x1a1   :  { %v119_v61 = vmul.f32 %v336_v49, %v118_v59 }
 0x1a2   :  { %vm143_vm8 = vcmp.ge.f32.partialorder %v141_v60, 0.0  ;;  %v145_v62 = vmul.f32 0.01, %v141_v60 }
 0x1a3   :  { %v123_v63 = vsel %vm122_vm7, %v336_v49, %v119_v61 }
 0x1a4   :  { %v147_v0 = vsel %vm143_vm8, %v141_v60, %v145_v62  ;;  %v134_v1 = vmul.f32 %v123_v63, %v455_v20 }
 0x1a5   :  { %184 = vmatmul.f32.vlgmr.msra.gmra.mxu3 %v147_v0 }
 0x1a6   :  { %v137_v2 = vmul.f32 %v136_v52, %v134_v1  ;;  %v230_v52 = vperm.slane %v441_v5, 4 }
 0x1a8   :  { %v140_v3 = vadd.f32 %v139_v56, %v137_v2  ;;  %v233_v56 = vperm.slane %v441_v5, 5 }
 0x1aa   :  { %vm142_vm9 = vcmp.ge.f32.partialorder %v140_v3, 0.0  ;;  %v144_v4 = vmul.f32 0.01, %v140_v3 }
 0x1ac   :  { %v146_v6 = vsel %vm142_vm9, %v140_v3, %v144_v4 }
 0x1ad   :  { %181 = vmatmul.f32.vlgmr.msra.gmra.mxu1 %v146_v6  ;;  %v332_v6 = vld [vmem:[%s590_s5] ss:$0 sm:$0xff] }
 0x228   :  { %v185_v8 = vpop.f32.mrf.mxu3 }
 0x229   :  { %v186_v9 = vadd.f32 %v185_v8, %v164_v7 }
 0x22a   :  { %v182_v10 = vpop.f32.mrf.mxu1 }
 0x22b   :  { %190 = vadd.xlane.f32.xlu2 %v186_v9  ;;  %v183_v12 = vadd.f32 %v182_v10, %v164_v7 }
 0x233   :  { %188 = vadd.xlane.f32.xlu2 %v183_v12 }
 0x29e   :  { %v191_v13 = vpop.xlane.xlu2 %190 }
 0x29f   :  { %v193_v14 = vmul.f32 0.03125, %v191_v13 }
 0x2a1   :  { %v195_v15 = vsub.f32 %v186_v9, %v193_v14 }
 0x2a3   :  { %v514_v16 = vsel %vm60_vm1, %v195_v15, 0.0 }
 0x2a4   :  { %v199_v17 = vmul.f32 %v514_v16, %v514_v16 }
 0x2a6   :  { %202 = vadd.xlane.f32.xlu0 %v199_v17  ;;  %v189_v18 = vpop.xlane.xlu2 %188 }
 0x2a7   :  { %v192_v19 = vmul.f32 0.03125, %v189_v18 }
 0x2a9   :  { %v194_v20 = vsub.f32 %v183_v12, %v192_v19 }
 0x2ab   :  { %v520_v21 = vsel %vm60_vm1, %v194_v20, 0.0 }
 0x2ac   :  { %v198_v22 = vmul.f32 %v520_v21, %v520_v21 }
 0x2ae   :  { %200 = vadd.xlane.f32.xlu1 %v198_v22 }
 0x319   :  { %v203_v38 = vpop.xlane.xlu0 %202 }
 0x31a   :  { %v205_v39 = vmul.f32 0.03125, %v203_v38 }
 0x31c   :  { %v207_v40 = vadd.f32 1e-05, %v205_v39 }
 0x31e   :  { %337 = vrsqrt.f32 %v207_v40  ;;  %vm224_vm11 = vweird.f32 %v207_v40 }
 0x321   :  { %v201_v41 = vpop.xlane.xlu1 %200 }
 0x322   :  { %v204_v42 = vmul.f32 0.03125, %v201_v41 }
 0x324   :  { %v338_v43 = vpop.eup %337  ;;  %v206_v44 = vadd.f32 1e-05, %v204_v42 }
 0x325   :  { %v219_v45 = vmul.f32 %v338_v43, %v207_v40  ;;  %vm225_vm10 = vweird.f32 %v338_v43 }
 0x326   :  { %339 = vrsqrt.f32 %v206_v44  ;;  %vm226_vm12 = vmor %vm224_vm11, %vm225_vm10  ;;  %vm214_vm14 = vweird.f32 %v206_v44 }
 0x327   :  { %v220_v46 = vmul.f32 %v338_v43, %v219_v45 }
 0x329   :  { %v221_v47 = vmul.f32 0.5, %v220_v46 }
 0x32b   :  { %v222_v48 = vsub.f32 1.5, %v221_v47 }
 0x32c   :  { %v340_v49 = vpop.eup %339 }
 0x32d   :  { %v223_v50 = vmul.f32 %v338_v43, %v222_v48  ;;  %v209_v51 = vmul.f32 %v340_v49, %v206_v44  ;;  %vm215_vm13 = vweird.f32 %v340_v49 }
 0x32e   :  { %vm216_vm15 = vmor %vm214_vm14, %vm215_vm13 }
 0x32f   :  { %v227_v53 = vsel %vm226_vm12, %v338_v43, %v223_v50  ;;  %v210_v54 = vmul.f32 %v340_v49, %v209_v51 }
 0x330   :  { %v229_v55 = vmul.f32 %v227_v53, %v514_v16 }
 0x331   :  { %v211_v57 = vmul.f32 0.5, %v210_v54 }
 0x332   :  { %v232_v58 = vmul.f32 %v230_v52, %v229_v55 }
 0x333   :  { %v212_v59 = vsub.f32 1.5, %v211_v57 }
 0x334   :  { %v235_v60 = vadd.f32 %v233_v56, %v232_v58 }
 0x335   :  { %v213_v61 = vmul.f32 %v340_v49, %v212_v59 }
 0x336   :  { %vm237_vm0 = vcmp.ge.f32.partialorder %v235_v60, 0.0  ;;  %v239_v62 = vmul.f32 0.01, %v235_v60 }
 0x337   :  { %v217_v63 = vsel %vm216_vm15, %v340_v49, %v213_v61 }
 0x338   :  { %v228_v0 = vmul.f32 %v217_v63, %v520_v21  ;;  %v241_v1 = vsel %vm237_vm0, %v235_v60, %v239_v62 }
 0x339   :  { %281 = vmatmul.f32.vlgmr.msra.gmra.mxu2 %v241_v1 }
 0x33a   :  { %v231_v2 = vmul.f32 %v230_v52, %v228_v0 }
 0x33c   :  { %v234_v3 = vadd.f32 %v233_v56, %v231_v2 }
 0x33e   :  { %vm236_vm1 = vcmp.ge.f32.partialorder %v234_v3, 0.0  ;;  %v238_v4 = vmul.f32 0.01, %v234_v3 }
 0x340   :  { %v240_v5 = vsel %vm236_vm1, %v234_v3, %v238_v4 }
 0x341   :  { %278 = vmatmul.f32.vlgmr.msrb.gmra.mxu0 %v240_v5 }
 0x3bc   :  { %v282_v7 = vpop.f32.mrf.mxu2 }
 0x3bd   :  { %v283_v8 = vadd.f32 %v332_v6, %v282_v7 }
 0x3be   :  { %v279_v9 = vpop.f32.mrf.mxu0 }
 0x3bf   :  { %287 = vst.msk [vmem:[%s591_s6 + $0x8] sm:$0xff] %vm285_vm2, %v283_v8  ;;  %v280_v10 = vadd.f32 %v332_v6, %v279_v9 }
 0x3c1   :  { %286 = vst.msk [vmem:[%s591_s6] sm:$0xff] %vm285_vm2, %v280_v10 }
 0x3c2   :  { %292 = vsyncpa [#allocation3], 1 }
 0x3c3   :  { %293 = vsyncpa [#allocation5], 1 }

</bundles_post_ra>
